<compile_context>
chip_gen: v6e
topology: v6e:2x2x1
jax: 0.10.0
libtpu: 0.0.40
codegen_flags: <defaults>
</compile_context>

<pallas_src>
import jax
import jax.numpy as jnp
from jax.experimental import pallas as pl
from jax.experimental.pallas import tpu as pltpu

D_IN, D_H1, D_H2, D_OUT = 256, 220, 160, 128


def fc_kernel(x_ref, wf_ref, bf_ref, o_ref):
    # x_ref: (TB, 256); wf_ref: (256, 128); bf_ref: (1, 128)  -- all VMEM tiles.
    y = jnp.dot(x_ref[...], wf_ref[...], preferred_element_type=jnp.float32)
    o_ref[...] = (y + bf_ref[...]).astype(o_ref.dtype)


def _fold_params(params):
    """Exact affine fold of the activation-free chain (done in HIGHEST precision)."""
    hp = jax.lax.Precision.HIGHEST
    w1, b1 = params["w1"], params["b1"]   # (256, 220), (1, 220)
    w2, b2 = params["w2"], params["b2"]   # (220, 160), (1, 160)
    w3, b3 = params["w3"], params["b3"]   # (160, 128), (1, 128)
    wf = jnp.dot(jnp.dot(w1, w2, precision=hp), w3, precision=hp)          # (256, 128)
    bf = (jnp.dot(jnp.dot(b1, w2, precision=hp), w3, precision=hp)
          + jnp.dot(b2, w3, precision=hp) + b3)                            # (1, 128)
    return wf, bf


def _choose_tiling(B, tb):
    """Pick a sublane-aligned batch tile; guarantee >=2 grid steps for B >= 512 so
    both v7x TensorCores get sharded work."""
    if B > tb:
        tb_eff = tb
    elif B >= 512:
        tb_eff = pl.cdiv(pl.cdiv(B, 2), 8) * 8
    else:
        tb_eff = max(8, pl.cdiv(B, 8) * 8)
    b_pad = pl.cdiv(B, tb_eff) * tb_eff
    return tb_eff, b_pad


def fc_network(x, params, *, tb=2048):
    """x: (B, 256) float32. Returns (B, 128) float32."""
    B = x.shape[0]
    wf, bf = _fold_params(params)

    tb_eff, b_pad = _choose_tiling(B, tb)
    if b_pad != B:
        x = jnp.pad(x, ((0, b_pad - B), (0, 0)))

    grid = (b_pad // tb_eff,)
    const = lambda shape: pl.BlockSpec(shape, lambda i: (0, 0))  # resident weight/bias

    cost = pl.CostEstimate(
        flops=2 * b_pad * D_IN * D_OUT,
        transcendentals=0,
        bytes_accessed=b_pad * (D_IN + D_OUT) * 4 + (D_IN * D_OUT + D_OUT) * 4,
    )

    out = pl.pallas_call(
        fc_kernel,
        out_shape=jax.ShapeDtypeStruct((b_pad, D_OUT), jnp.float32),
        grid_spec=pltpu.PrefetchScalarGridSpec(
            num_scalar_prefetch=0,
            grid=grid,
            in_specs=[
                pl.BlockSpec((tb_eff, D_IN), lambda i: (i, 0)),  # x tile (streamed)
                const((D_IN, D_OUT)),                            # folded weight
                const((1, D_OUT)),                               # folded bias
            ],
            out_specs=pl.BlockSpec((tb_eff, D_OUT), lambda i: (i, 0)),
        ),
        compiler_params=pltpu.CompilerParams(
            dimension_semantics=("parallel",),   # batch axis shards across TCs
        ),
        cost_estimate=cost,
    )(x, wf, bf)

    return out[:B]


def init_params(key):
    """PyTorch nn.Linear default init (U[-1/sqrt(fan_in), +1/sqrt(fan_in)]).
    Weights stored transposed: (in_features, out_features)."""
    ks = jax.random.split(key, 6)

    def linear(kw, kb, fan_in, fan_out):
        bound = 1.0 / jnp.sqrt(fan_in)
        w = jax.random.uniform(kw, (fan_in, fan_out), jnp.float32, -bound, bound)
        b = jax.random.uniform(kb, (1, fan_out), jnp.float32, -bound, bound)
        return w, b

    w1, b1 = linear(ks[0], ks[1], D_IN, D_H1)
    w2, b2 = linear(ks[2], ks[3], D_H1, D_H2)
    w3, b3 = linear(ks[4], ks[5], D_H2, D_OUT)
    return {"w1": w1, "b1": b1, "w2": w2, "b2": b2, "w3": w3, "b3": b3}


def _reference(x, params):
    hp = jax.lax.Precision.HIGHEST
    h = jnp.dot(x, params["w1"], precision=hp) + params["b1"]
    h = jnp.dot(h, params["w2"], precision=hp) + params["b2"]
    h = jnp.dot(h, params["w3"], precision=hp) + params["b3"]
    return h


if __name__ == "__main__":
    key = jax.random.PRNGKey(0)
    kp, kx1, kx2 = jax.random.split(key, 3)
    params = init_params(kp)

    # Case 1: small ragged batch (exercises padding + single-tile path).
    B1 = 13
    x1 = jax.random.normal(kx1, (B1, D_IN), jnp.float32)
    out1 = jax.block_until_ready(fc_network(x1, params))
    ref1 = _reference(x1, params)
    assert out1.shape == (B1, D_OUT)
    assert jnp.allclose(out1, ref1, atol=2e-3, rtol=2e-3)

    # Case 2: batch large enough to get >= 2 grid steps (v7x dual-TC path).
    B2 = 600
    x2 = jax.random.normal(kx2, (B2, D_IN), jnp.float32)
    out2 = jax.block_until_ready(fc_network(x2, params))
    ref2 = _reference(x2, params)
    assert out2.shape == (B2, D_OUT)
    assert jnp.allclose(out2, ref2, atol=2e-3, rtol=2e-3)

    print("KERNEL_OK")
</pallas_src>

<mosaic_0001>
module attributes {stable_mosaic.version = 11 : i64} {
  func.func @fc_kernel(%arg0: i32, %arg1: memref<16x256xf32, #tpu.memory_space<vmem>>, %arg2: memref<256x128xf32, #tpu.memory_space<vmem>>, %arg3: memref<1x128xf32, #tpu.memory_space<vmem>>, %arg4: memref<16x128xf32, #tpu.memory_space<vmem>>) attributes {dimension_semantics = [#tpu.dimension_semantics<parallel>], iteration_bounds = array<i64: 1>, scalar_prefetch = 0 : i64, scratch_operands = 0 : i64, tpu.core_type = #tpu.core_type<tc>, window_params = [{transform_indices = @transform_0, window_bounds = array<i64: 16, 256>}, {pipeline_mode = #tpu.pipeline_mode<synchronous>, transform_indices = @transform_1, window_bounds = array<i64: 256, 128>}, {pipeline_mode = #tpu.pipeline_mode<synchronous>, transform_indices = @transform_2, window_bounds = array<i64: 1, 128>}, {transform_indices = @transform_3, window_bounds = array<i64: 16, 128>}]} {
    %c0 = arith.constant 0 : index
    %c0_0 = arith.constant 0 : index
    %0 = vector.load %arg1[%c0, %c0_0] : memref<16x256xf32, #tpu.memory_space<vmem>>, vector<16x256xf32>
    %c0_1 = arith.constant 0 : index
    %c0_2 = arith.constant 0 : index
    %1 = vector.load %arg2[%c0_1, %c0_2] : memref<256x128xf32, #tpu.memory_space<vmem>>, vector<256x128xf32>
    %cst = arith.constant dense<0.000000e+00> : vector<16x128xf32>
    %2 = tpu.matmul %0, %1, %cst {dimension_numbers = #tpu.dot_dimension_numbers<[1], [0], [0], [1], [0, 0, 1, 1], [], []>} : vector<16x256xf32>, vector<256x128xf32>, vector<16x128xf32> -> vector<16x128xf32>
    %c0_3 = arith.constant 0 : index
    %c0_4 = arith.constant 0 : index
    %3 = vector.load %arg3[%c0_3, %c0_4] : memref<1x128xf32, #tpu.memory_space<vmem>>, vector<1x128xf32>
    %4 = vector.broadcast %3 : vector<1x128xf32> to vector<16x128xf32>
    %5 = arith.addf %2, %4 : vector<16x128xf32>
    %c0_5 = arith.constant 0 : index
    %c0_6 = arith.constant 0 : index
    %6 = vector.load %arg4[%c0_5, %c0_6] : memref<16x128xf32, #tpu.memory_space<vmem>>, vector<16x128xf32>
    tpu.vector_store %arg4[%c0_5, %c0_6], %5 {strides = array<i32>} : memref<16x128xf32, #tpu.memory_space<vmem>>, vector<16x128xf32>,
    return
  }
  func.func @transform_0(%arg0: i32) -> (i32, i32) {
    %c0_i32 = arith.constant 0 : i32
    %c0_i32_0 = arith.constant 0 : i32
    return %arg0, %c0_i32 : i32, i32
  }
  func.func @transform_1(%arg0: i32) -> (i32, i32) {
    %c0_i32 = arith.constant 0 : i32
    %c0_i32_0 = arith.constant 0 : i32
    %c0_i32_1 = arith.constant 0 : i32
    return %c0_i32, %c0_i32_0 : i32, i32
  }
  func.func @transform_2(%arg0: i32) -> (i32, i32) {
    %c0_i32 = arith.constant 0 : i32
    %c0_i32_0 = arith.constant 0 : i32
    %c0_i32_1 = arith.constant 0 : i32
    return %c0_i32, %c0_i32_0 : i32, i32
  }
  func.func @transform_3(%arg0: i32) -> (i32, i32) {
    %c0_i32 = arith.constant 0 : i32
    %c0_i32_0 = arith.constant 0 : i32
    return %arg0, %c0_i32 : i32, i32
  }
}

</mosaic_0001>

<bundles_post_ra>
// kernel: tpu_custom_call.1
= control target key start
LH: loop header
LB: loop body
LE: loop exit
PB: predicated region body
PF: predicated region fallthrough
CT: control target
= control target key end

     0   :  { %8 = vsyncpa [#allocation3], 0  ;;  %s370_s0 = inlined_call_operand.hbm [shape: f32[16,256], index: 0, kind: input, shape index: {}]   ;;  %s371_s1 = inlined_call_operand.hbm [shape: f32[256,128], index: 1, kind: input, shape index: {}]   ;;  %s372_s2 = inlined_call_operand.vmem [shape: f32[1,128], index: 2, kind: input, shape index: {}]   ;;  %s373_s3 = inlined_call_operand.hbm [shape: f32[16,128], index: 3, kind: output, shape index: {}]  }
   0x1   :  { %9 = vsyncpa [#allocation6], 0 }
   0x2   :  { %10 = vsyncpa [#allocation4], 0  ;;  %s325_s12 = smov [#allocation2]  }
   0x3   :  { %s16_s13 = sshll.u32 %s325_s12, 4  ;;  %s17_s13 = int_to_ptr.vmem [resolvable:$true] %s16_s13 }
   0x4   :  { %s267_s14 = scalar_lea.vmem %s17_s13, 512  ;;  %p272_p1 = scmp.lt.s32.totalorder %s17_s13, %s17_s13 }
   0x5   :  { %p268_p0 = scmp.ne.s32.totalorder %s17_s13, %s267_s14  ;;  %p273_p2 = scmp.lt.s32.totalorder %s267_s14, %s267_s14 }
   0x7   :  { %p274_p3 = por %p273_p2, %p272_p1 }
   0x9   :  { %p275_p4 = pnand %p274_p3, %p268_p0 }
   0xb   :  { %278 = shalt.err (!%p275_p4)
}
   0xc   :  { %s326_s15 = smov 256   ;;  %s327_s16 = smov 16  }
   0xd   :  { %22 = dma.hbm_to_vmem [thread:$0]  %s370_s0, 512, %s17_s13, [#allocation3], %s326_s15, %s326_s15, %s327_s16  }
   0xe   :  { %s328_s19 = smov [#allocation5]  }
   0xf   :  { %s28_s20 = sshll.u32 %s328_s19, 4  ;;  %s29_s20 = int_to_ptr.vmem [resolvable:$true] %s28_s20 }
  0x10   :  { %s287_s21 = scalar_lea.vmem %s29_s20, 4096  ;;  %p292_p6 = scmp.lt.s32.totalorder %s29_s20, %s29_s20 }
  0x11   :  { %p288_p5 = scmp.ne.s32.totalorder %s29_s20, %s287_s21  ;;  %p293_p7 = scmp.lt.s32.totalorder %s287_s21, %s287_s21 }
  0x13   :  { %p294_p8 = por %p293_p7, %p292_p6 }
  0x15   :  { %p295_p9 = pnand %p294_p8, %p288_p5 }
  0x17   :  { %298 = shalt.err (!%p295_p9)
}
  0x18   :  { %s329_s22 = smov 128   ;;  %s330_s23 = smov 8  }
  0x19   :  { %34 = dma.hbm_to_vmem [thread:$0]  %s371_s1, 4096, %s29_s20, [#allocation6], %s329_s22, %s329_s22, %s330_s23  }
  0x1a   :  { %319 = dma.done.wait [#allocation3], 512  }
  0x1b   :  { %320 = vsyncadd [#allocation3], 4294966784 }
  0x1c   :  { %321 = dma.done.wait [#allocation6], 4096  }
  0x1d   :  { %322 = vsyncadd [#allocation6], 4294963200  ;;  %v78_v0 = vld [vmem:[#allocation5 + $0xf8] sm:$0xff]  ;;  %v77_v2 = vld [vmem:[#allocation5 + $0xf0] sm:$0xff]  ;;  %s331_s26 = smov [#allocation7]  }
  0x1e   :  { %v62_v1 = vld [vmem:[#allocation5 + $0x78] sm:$0xff]  ;;  %182 = vmatprep.subr.mxu0 %v78_v0  ;;  %220 = vmatprep.subr.mxu1 %v78_v0  ;;  %v61_v3 = vld [vmem:[#allocation5 + $0x70] sm:$0xff]  ;;  %v76_v4 = vld [vmem:[#allocation5 + $0xe8] sm:$0xff]  ;;  %s168_s27 = sshll.u32 %s331_s26, 4  ;;  %s169_s27 = int_to_ptr.vmem [resolvable:$true] %s168_s27 }
  0x1f   :  { %183 = vmatpush3.msra.mxu0 %v62_v1  ;;  %236 = vmatpush3.msra.mxu1 %v62_v1  ;;  %v60_v5 = vld [vmem:[#allocation5 + $0x68] sm:$0xff]  ;;  %v75_v6 = vld [vmem:[#allocation5 + $0xe0] sm:$0xff]  ;;  %v74_v8 = vld [vmem:[#allocation5 + $0xd8] sm:$0xff]  ;;  %s299_s28 = scalar_lea.vmem %s169_s27, 256  ;;  %p304_p11 = scmp.lt.s32.totalorder %s169_s27, %s169_s27 }
  0x20   :  { %184 = vmatprep.subr.mxu0 %v77_v2  ;;  %221 = vmatprep.subr.mxu1 %v77_v2  ;;  %v59_v7 = vld [vmem:[#allocation5 + $0x60] sm:$0xff]  ;;  %v58_v9 = vld [vmem:[#allocation5 + $0x58] sm:$0xff]  ;;  %v73_v10 = vld [vmem:[#allocation5 + $0xd0] sm:$0xff]  ;;  %p300_p10 = scmp.ne.s32.totalorder %s169_s27, %s299_s28  ;;  %p305_p12 = scmp.lt.s32.totalorder %s299_s28, %s299_s28 }
  0x21   :  { %185 = vmatpush3.msra.mxu0 %v61_v3  ;;  %237 = vmatpush3.msra.mxu1 %v61_v3  ;;  %v57_v11 = vld [vmem:[#allocation5 + $0x50] sm:$0xff]  ;;  %v72_v12 = vld [vmem:[#allocation5 + $0xc8] sm:$0xff]  ;;  %v71_v14 = vld [vmem:[#allocation5 + $0xc0] sm:$0xff] }
  0x22   :  { %186 = vmatprep.subr.mxu0 %v76_v4  ;;  %222 = vmatprep.subr.mxu1 %v76_v4  ;;  %v56_v13 = vld [vmem:[#allocation5 + $0x48] sm:$0xff]  ;;  %v55_v15 = vld [vmem:[#allocation5 + $0x40] sm:$0xff]  ;;  %v70_v16 = vld [vmem:[#allocation5 + $0xb8] sm:$0xff]  ;;  %p306_p13 = por %p305_p12, %p304_p11 }
  0x23   :  { %187 = vmatpush3.msra.mxu0 %v60_v5  ;;  %238 = vmatpush3.msra.mxu1 %v60_v5  ;;  %v54_v17 = vld [vmem:[#allocation5 + $0x38] sm:$0xff]  ;;  %v69_v18 = vld [vmem:[#allocation5 + $0xb0] sm:$0xff]  ;;  %v68_v20 = vld [vmem:[#allocation5 + $0xa8] sm:$0xff] }
  0x24   :  { %188 = vmatprep.subr.mxu0 %v75_v6  ;;  %223 = vmatprep.subr.mxu1 %v75_v6  ;;  %v53_v19 = vld [vmem:[#allocation5 + $0x30] sm:$0xff]  ;;  %v52_v21 = vld [vmem:[#allocation5 + $0x28] sm:$0xff]  ;;  %v67_v22 = vld [vmem:[#allocation5 + $0xa0] sm:$0xff]  ;;  %p307_p0 = pnand %p306_p13, %p300_p10 }
  0x25   :  { %189 = vmatpush3.msra.mxu0 %v59_v7  ;;  %239 = vmatpush3.msra.mxu1 %v59_v7  ;;  %v51_v23 = vld [vmem:[#allocation5 + $0x20] sm:$0xff]  ;;  %v66_v24 = vld [vmem:[#allocation5 + $0x98] sm:$0xff]  ;;  %v65_v26 = vld [vmem:[#allocation5 + $0x90] sm:$0xff] }
  0x26   :  { %190 = vmatprep.subr.mxu0 %v74_v8  ;;  %224 = vmatprep.subr.mxu1 %v74_v8  ;;  %v50_v25 = vld [vmem:[#allocation5 + $0x18] sm:$0xff]  ;;  %v49_v27 = vld [vmem:[#allocation5 + $0x10] sm:$0xff]  ;;  %v64_v28 = vld [vmem:[#allocation5 + $0x88] sm:$0xff] }
  0x27   :  { %191 = vmatpush3.msra.mxu0 %v58_v9  ;;  %240 = vmatpush3.msra.mxu1 %v58_v9  ;;  %v48_v29 = vld [vmem:[#allocation5 + $0x8] sm:$0xff]  ;;  %v63_v30 = vld [vmem:[#allocation5 + $0x80] sm:$0xff]  ;;  %v46_v33 = vld [vmem:[#allocation2 + $0x18] sm:$0xff] }
  0x28   :  { %192 = vmatprep.subr.mxu0 %v73_v10  ;;  %225 = vmatprep.subr.mxu1 %v73_v10  ;;  %v47_v31 = vld [vmem:[#allocation5] sm:$0xff]  ;;  %v44_v32 = vld [vmem:[#allocation2 + $0x8] sm:$0xff]  ;;  %v45_v35 = vld [vmem:[#allocation2 + $0x10] sm:$0xff] }
  0x29   :  { %193 = vmatpush3.msra.mxu0 %v57_v11  ;;  %241 = vmatpush3.msra.mxu1 %v57_v11  ;;  %v43_v34 = vld [vmem:[#allocation2] sm:$0xff] }
  0x2a   :  { %194 = vmatprep.subr.mxu0 %v72_v12  ;;  %226 = vmatprep.subr.mxu1 %v72_v12  ;;  %v181_v38 = vld [vmem:[%s372_s2] ss:$0 sm:$0xff] }
  0x2b   :  { %195 = vmatpush3.msra.mxu0 %v56_v13  ;;  %242 = vmatpush3.msra.mxu1 %v56_v13 }
  0x2c   :  { %196 = vmatprep.subr.mxu0 %v71_v14  ;;  %227 = vmatprep.subr.mxu1 %v71_v14 }
  0x2d   :  { %197 = vmatpush3.msra.mxu0 %v55_v15  ;;  %243 = vmatpush3.msra.mxu1 %v55_v15 }
  0x2e   :  { %198 = vmatprep.subr.mxu0 %v70_v16  ;;  %228 = vmatprep.subr.mxu1 %v70_v16 }
  0x2f   :  { %199 = vmatpush3.msra.mxu0 %v54_v17  ;;  %244 = vmatpush3.msra.mxu1 %v54_v17 }
  0x30   :  { %200 = vmatprep.subr.mxu0 %v69_v18  ;;  %229 = vmatprep.subr.mxu1 %v69_v18 }
  0x31   :  { %201 = vmatpush3.msra.mxu0 %v53_v19  ;;  %245 = vmatpush3.msra.mxu1 %v53_v19 }
  0x32   :  { %202 = vmatprep.subr.mxu0 %v68_v20  ;;  %230 = vmatprep.subr.mxu1 %v68_v20 }
  0x33   :  { %203 = vmatpush3.msra.mxu0 %v52_v21  ;;  %246 = vmatpush3.msra.mxu1 %v52_v21 }
  0x34   :  { %204 = vmatprep.subr.mxu0 %v67_v22  ;;  %231 = vmatprep.subr.mxu1 %v67_v22 }
  0x35   :  { %205 = vmatpush3.msra.mxu0 %v51_v23  ;;  %247 = vmatpush3.msra.mxu1 %v51_v23 }
  0x36   :  { %206 = vmatprep.subr.mxu0 %v66_v24  ;;  %232 = vmatprep.subr.mxu1 %v66_v24 }
  0x37   :  { %207 = vmatpush3.msra.mxu0 %v50_v25  ;;  %248 = vmatpush3.msra.mxu1 %v50_v25 }
  0x38   :  { %208 = vmatprep.subr.mxu0 %v65_v26  ;;  %233 = vmatprep.subr.mxu1 %v65_v26 }
  0x39   :  { %209 = vmatpush3.msra.mxu0 %v49_v27  ;;  %249 = vmatpush3.msra.mxu1 %v49_v27 }
  0x3a   :  { %210 = vmatprep.subr.mxu0 %v64_v28  ;;  %234 = vmatprep.subr.mxu1 %v64_v28 }
  0x3b   :  { %211 = vmatpush3.msra.mxu0 %v48_v29  ;;  %250 = vmatpush3.msra.mxu1 %v48_v29 }
  0x3c   :  { %212 = vmatprep.subr.mxu0 %v63_v30  ;;  %235 = vmatprep.subr.mxu1 %v63_v30 }
  0x3d   :  { %213 = vmatpush3.msra.mxu0 %v47_v31  ;;  %251 = vmatpush3.msra.mxu1 %v47_v31 }
  0x3e   :  { %150 = vmatprep.mubr.f32.mxu0 %v44_v32  ;;  %155 = vmatprep.mubr.f32.mxu1 %v46_v33 }
  0x3f   :  { %151 = vmatmul.mubr.f32.vlgmr.msra.gmra.mxu0 %v43_v34  ;;  %156 = vmatmul.mubr.f32.vlgmr.msra.gmra.mxu1 %v45_v35 }
  0xff   :  { %v214_v36 = vpop.f32.mrf.mxu0  ;;  %v217_v37 = vpop.f32.mrf.mxu1 }
 0x101   :  { %v215_v39 = vpop.f32.mrf.mxu0  ;;  %v218_v40 = vpop.f32.mrf.mxu1 }
 0x102   :  { %v216_v41 = vadd.f32 %v215_v39, %v214_v36  ;;  %v219_v42 = vadd.f32 %v218_v40, %v217_v37 }
 0x104   :  { %v153_v43 = vadd.f32 %v216_v41, %v181_v38  ;;  %v158_v44 = vadd.f32 %v219_v42, %v181_v38 }
 0x106   :  { %161 = vst [vmem:[#allocation7] sm:$0xff] %v153_v43  ;;  %162 = vst [vmem:[#allocation7 + $0x8] sm:$0xff] %v158_v44 }
 0x107   :  { %310 = shalt.err (!%p307_p0)
}
 0x108   :  { %174 = dma.vmem_to_hbm [thread:$0]  %s169_s27, 256, %s373_s3, [#allocation4], %s329_s22, %s329_s22, %s330_s23  }
 0x109   :  { %323 = dma.done.wait [#allocation4], 256  }
 0x10a   :  { %324 = vsyncadd [#allocation4], 4294967040 }
 0x10b   :  { %178 = vsyncpa [#allocation3], 1 }
 0x10c   :  { %179 = vsyncpa [#allocation6], 1 }
 0x10d   :  { %180 = vsyncpa [#allocation4], 1 }

</bundles_post_ra>
